<compile_context>
chip_gen: v7x
topology: tpu7x:2x2x1
jax: 0.10.0
libtpu: 0.0.40
codegen_flags: <defaults>
</compile_context>

<pallas_src>
import functools

import numpy as np
import jax
import jax.numpy as jnp
from jax.experimental import pallas as pl
from jax.experimental.pallas import tpu as pltpu

SELU_ALPHA = 1.6732632423543772
SELU_SCALE = 1.0507009873554805


def _selu(x):
    # exp(x)-1 (not expm1) is kept for guaranteed Mosaic lowering; the extra
    # rounding near 0 is orders of magnitude below the test tolerances.
    return SELU_SCALE * jnp.where(x > 0.0, x, SELU_ALPHA * (jnp.exp(x) - 1.0))


# ---------------------------------------------------------------------------
# Fused Pallas kernel: all conv layers for a block of nb samples.
# ---------------------------------------------------------------------------
def _fused_cnn_kernel(x_ref, w_ref, mask_ref, o_ref, patch_ref, *,
                      W, K, L, Cmax, KKC_PAD, Cout_pad, LW):
    """One grid step = whole conv stack for nb samples.

    x_ref:     (Cmax, LW)          f32 inputs, nb samples side-by-side on lanes
    w_ref:     (L, Cmax, KKC_PAD)  im2col weights + folded-bias column
    mask_ref:  (K*K, Cmax, LW)     {0,1} border-validity masks (f32, pre-baked)
    o_ref:     (Cout_pad, LW)      f32 outputs
    patch_ref: (KKC_PAD, LW)       persistent im2col scratch (compute dtype)
    """
    pad = K // 2
    KKC = K * K * Cmax
    cdtype = patch_ref.dtype

    # Padded contraction tail: row KKC is the constant-1 "bias row"; the rest
    # are zeros so the zero-padded weight columns never multiply uninitialized
    # VMEM (possible NaN/Inf).  Tiny (KKC_PAD-KKC rows), redone every step so it
    # is valid on every core when the parallel grid is sharded across TCs.
    n_tail = KKC_PAD - KKC
    row_ids = jax.lax.broadcasted_iota(jnp.int32, (n_tail, LW), 0)
    patch_ref[pl.ds(KKC, n_tail), :] = jnp.where(row_ids == 0, 1.0, 0.0).astype(cdtype)

    act = x_ref[...]                                   # (Cmax, LW) f32
    for l in range(L):                                 # static unroll: layers
        # im2col: roll (XLU) + precomputed border mask, stored straight into
        # the reused scratch patch (no concatenate).
        for kh in range(K):
            for kw in range(K):
                t = kh * K + kw
                delta = (kh - pad) * W + (kw - pad)    # flat source-pixel offset
                if delta == 0:
                    masked = act                       # center tap: no shift/mask
                else:
                    shifted = pltpu.roll(act, shift=(-delta) % LW, axis=1)
                    masked = shifted * mask_ref[t]     # zero "same"-padding taps
                patch_ref[pl.ds(t * Cmax, Cmax), :] = masked.astype(cdtype)
        # ONE deep MXU matmul per layer for ALL samples; bias folded in via the
        # constant-1 patch row; f32 accumulation.
        acc = jnp.dot(w_ref[l], patch_ref[...],
                      preferred_element_type=jnp.float32)      # (Cmax, LW) f32
        act = _selu(acc) if l < L - 1 else acc         # SELU on hidden layers only
    o_ref[...] = act[:Cout_pad, :].astype(o_ref.dtype)


# ---------------------------------------------------------------------------
# Wrapper-side parameter / layout preparation.
# ---------------------------------------------------------------------------
def _tap_masks(H, W, K):
    """{0,1} validity mask of every tap over the flattened H*W positions."""
    pad = K // 2
    pos = np.arange(H * W)
    hh, ww = pos // W, pos % W
    masks = np.zeros((K * K, 1, H * W), np.float32)
    for kh in range(K):
        for kw in range(K):
            dh, dw = kh - pad, kw - pad
            valid = ((hh + dh >= 0) & (hh + dh < H) &
                     (ww + dw >= 0) & (ww + dw < W))
            masks[kh * K + kw, 0, :] = valid
    return masks


def _flatten_layer(w, b, Cmax, KKC, KKC_PAD):
    """(K,K,Cin,Cout) HWIO weight + (Cout,) bias -> padded im2col weight with
    the bias folded into column KKC (matching the kernel's constant-1 row)."""
    K, _, Cin, Cout = w.shape
    w_pad = jnp.zeros((K, K, Cmax, Cmax), jnp.float32).at[:, :, :Cin, :Cout].set(w)
    # Row/col order matches the kernel patch: k = (kh*K + kw)*Cmax + ci.
    w_flat = jnp.transpose(w_pad, (3, 0, 1, 2)).reshape(Cmax, KKC)
    b_pad = jnp.zeros((Cmax,), jnp.float32).at[:Cout].set(b)
    w_full = jnp.zeros((Cmax, KKC_PAD), jnp.float32)
    w_full = w_full.at[:, :KKC].set(w_flat)
    w_full = w_full.at[:, KKC].set(b_pad)            # folded bias column
    return w_full


def _pick_nb(N):
    """Samples per grid step: keep >=2 grid steps when N >= 2 (v7x has 2 TCs),
    otherwise as many samples per step as possible (more RHS lanes per MXU
    weight push, fewer ~0.35us grid-step overheads).  The cap keeps masks/patch
    far below the scoped VMEM limit; raise it (plus vmem_limit_bytes) for
    very large batches."""
    if N <= 1:
        return 1
    nb = min(32, max(1, N // 2))
    while N % nb:
        nb -= 1
    return nb


@functools.partial(jax.jit, static_argnames=("compute_dtype",))
def cnn_conv_stack(x_nchw, params, compute_dtype=jnp.bfloat16):
    """Fused Pallas forward of the conv stack -> (N, n_output_channels, H, W)."""
    N, Cin, H, W = x_nchw.shape
    layers = list(params["hidden"]) + [params["out"]]
    L = len(layers)
    K = layers[0][0].shape[0]
    if K % 2 != 1:
        # PyTorch Conv2d(padding=K//2) only preserves H x W for odd K.
        raise ValueError("kernel_size must be odd for 'same'-sized outputs")
    C_out = layers[-1][0].shape[-1]
    HW = H * W

    Cmax = max(8, Cin, C_out, *[wl.shape[-1] for wl, _ in layers])
    Cmax = -(-Cmax // 8) * 8                       # sublane multiple
    Cout_pad = -(-C_out // 8) * 8                  # only these channels written
    KKC = K * K * Cmax
    KKC_PAD = -(-(KKC + 1) // 128) * 128           # +1 bias row, 128-deep MXU

    nb = _pick_nb(N)
    if (nb * HW) % 128 != 0:                       # lane-divisibility fallback
        nb = N                                     # block == full array is exempt
    LW = nb * HW

    # im2col weights (+ folded bias), channel/contraction padded, stacked,
    # cast once to the MXU operand dtype.
    w_all = jnp.stack([_flatten_layer(wl, bl, Cmax, KKC, KKC_PAD)
                       for wl, bl in layers]).astype(compute_dtype)

    # Border masks, pre-baked at (K*K, Cmax, LW): no in-kernel broadcasts.
    masks = jnp.tile(jnp.asarray(_tap_masks(H, W, K)), (1, Cmax, nb))

    # Input: channel-pad to Cmax, samples side-by-side on the lane axis.
    x_flat = jnp.transpose(x_nchw.reshape(N, Cin, HW).astype(jnp.float32),
                           (1, 0, 2)).reshape(Cin, N * HW)
    x_pad = jnp.zeros((Cmax, N * HW), jnp.float32).at[:Cin, :].set(x_flat)

    kernel = functools.partial(_fused_cnn_kernel, W=W, K=K, L=L, Cmax=Cmax,
                               KKC_PAD=KKC_PAD, Cout_pad=Cout_pad, LW=LW)

    out = pl.pallas_call(
        kernel,
        out_shape=jax.ShapeDtypeStruct((Cout_pad, N * HW), jnp.float32),
        grid=(N // nb,),
        in_specs=[
            pl.BlockSpec((Cmax, LW), lambda g: (0, g)),
            pl.BlockSpec((L, Cmax, KKC_PAD), lambda g: (0, 0, 0)),
            pl.BlockSpec((K * K, Cmax, LW), lambda g: (0, 0, 0)),
        ],
        out_specs=pl.BlockSpec((Cout_pad, LW), lambda g: (0, g)),
        scratch_shapes=[pltpu.VMEM((KKC_PAD, LW), compute_dtype)],
        compiler_params=pltpu.CompilerParams(
            dimension_semantics=("parallel",)),
    )(x_pad, w_all, masks)

    out = out.reshape(Cout_pad, N, HW).transpose(1, 0, 2)   # (N, Cout_pad, HW)
    return out[:, :C_out, :].reshape(N, C_out, H, W)


# ---------------------------------------------------------------------------
# Pure-XLA reference (for in-script correctness checks).
# ---------------------------------------------------------------------------
def _conv2d_same_ref(x, w, b):
    pad = w.shape[0] // 2
    out = jax.lax.conv_general_dilated(
        x, w, window_strides=(1, 1),
        padding=[(pad, pad), (pad, pad)],
        dimension_numbers=("NCHW", "HWIO", "NCHW"),
        precision=jax.lax.Precision.HIGHEST)
    return out + b[None, :, None, None]


def cnn_conv_stack_ref(x_nchw, params):
    h = x_nchw
    for (w, b) in params["hidden"]:
        h = _selu(_conv2d_same_ref(h, w, b))
    wo, bo = params["out"]
    return _conv2d_same_ref(h, wo, bo)


# ---------------------------------------------------------------------------
# Module-level glue matching the PyTorch forward semantics.
# ---------------------------------------------------------------------------
def init_params(key, n_input_channels, n_hidden_layers, n_hidden_kernels,
                n_output_channels, kernel_size):
    """Deterministic synthetic weights (shapes match the PyTorch module, HWIO)."""
    params = {"hidden": [], "out": None}
    cin = n_input_channels
    for _ in range(n_hidden_layers):
        key, kw_, kb_ = jax.random.split(key, 3)
        w = 0.1 * jax.random.normal(
            kw_, (kernel_size, kernel_size, cin, n_hidden_kernels), jnp.float32)
        b = 0.1 * jax.random.normal(kb_, (n_hidden_kernels,), jnp.float32)
        params["hidden"].append((w, b))
        cin = n_hidden_kernels
    key, kw_, kb_ = jax.random.split(key, 3)
    wo = 0.1 * jax.random.normal(
        kw_, (kernel_size, kernel_size, cin, n_output_channels), jnp.float32)
    bo = 0.1 * jax.random.normal(kb_, (n_output_channels,), jnp.float32)
    params["out"] = (wo, bo)
    return params


def cnn_forward(x_nchw, params, means, derivatives, crop_sizes):
    """Full forward matching the PyTorch module: list of per-sample uint8 arrays."""
    out_nchw = cnn_conv_stack(x_nchw, params)
    out_nchw = jax.block_until_ready(out_nchw)

    # TODO(synk): ragged per-sample boolean crop-mask gather + de-normalization
    # + uint8 cast returns a Python list of variable-shaped numpy arrays; no
    # clean Pallas equivalent, kept host-side (as in the PyTorch reference).
    out_np = np.asarray(out_nchw)            # (N, n_out_channels, H, W)
    crop_np = np.asarray(x_nchw[:, 1])       # channel 1 of each sample = crop mask
    results = []
    for i in range(out_np.shape[0]):
        mask = crop_np[i].astype(bool)                       # (H, W)
        vals = out_np[i][mask[None, :, :]]                   # ragged 1D gather
        vals = vals.reshape(crop_sizes[i])
        vals = vals * derivatives[i] + means[i]
        # .astype('uint8') wraps outside [0,255], matching torch's uint8 cast.
        results.append(vals.astype("uint8"))
    return results


if __name__ == "__main__":
    # Small, deterministic config: batch=2, in_channels=2, 16x16 spatial,
    # 2 hidden layers of 8 kernels, kernel_size=3, 1 output channel.
    N, C_IN, H, W = 2, 2, 16, 16
    N_HIDDEN_LAYERS, N_HIDDEN_KERNELS, C_OUT, KSIZE = 2, 8, 1, 3

    key = jax.random.PRNGKey(0)
    key, kx = jax.random.split(key)
    x = jax.random.normal(kx, (N, C_IN, H, W), jnp.float32)

    # Channel 1 holds a rectangular crop mask per sample (so reshape(crop_size) works).
    mask0 = jnp.zeros((H, W), jnp.float32).at[3:9, 2:7].set(1.0)   # crop 6 x 5
    mask1 = jnp.zeros((H, W), jnp.float32).at[5:9, 4:11].set(1.0)  # crop 4 x 7
    x = x.at[0, 1].set(mask0)
    x = x.at[1, 1].set(mask1)

    crop_sizes = [(6, 5), (4, 7)]
    means = [10.0, 20.0]
    derivatives = [5.0, 3.0]

    params = init_params(key, C_IN, N_HIDDEN_LAYERS, N_HIDDEN_KERNELS, C_OUT, KSIZE)

    out_ref = jax.block_until_ready(cnn_conv_stack_ref(x, params))

    # 1) f32 compute mode vs. high-precision XLA reference: validates the
    #    roll/tap/channel indexing tightly (indexing bugs give O(0.1-1) errors;
    #    the bound only leaves room for MXU pass precision).
    out_f32 = jax.block_until_ready(cnn_conv_stack(x, params, compute_dtype=jnp.float32))
    np.testing.assert_allclose(np.asarray(out_f32), np.asarray(out_ref),
                               rtol=1e-2, atol=5e-3)

    # 2) Default fast path (bf16 MXU operands, f32 accumulation): tolerance set
    #    by bf16 operand rounding over 3 layers.
    out_bf16 = jax.block_until_ready(cnn_conv_stack(x, params))
    np.testing.assert_allclose(np.asarray(out_bf16), np.asarray(out_ref),
                               rtol=2.5e-2, atol=1e-2)

    # Full forward (Pallas conv stack + host-side ragged crop post-processing).
    outputs = cnn_forward(x, params, means, derivatives, crop_sizes)

    assert len(outputs) == N
    assert outputs[0].shape == crop_sizes[0] and outputs[0].dtype == np.uint8
    assert outputs[1].shape == crop_sizes[1] and outputs[1].dtype == np.uint8
    print("KERNEL_OK")
</pallas_src>

<mosaic_0001>
module attributes {stable_mosaic.version = 11 : i64} {
  func.func @_fused_cnn_kernel(%arg0: i32, %arg1: memref<8x256xf32, #tpu.memory_space<vmem>>, %arg2: memref<3x8x128xf32, #tpu.memory_space<vmem>>, %arg3: memref<9x8x256xf32, #tpu.memory_space<vmem>>, %arg4: memref<8x256xf32, #tpu.memory_space<vmem>>, %arg5: memref<128x256xf32, #tpu.memory_space<vmem>>) attributes {dimension_semantics = [#tpu.dimension_semantics<parallel>], iteration_bounds = array<i64: 2>, scalar_prefetch = 0 : i64, scratch_operands = 1 : i64, tpu.core_type = #tpu.core_type<tc>, window_params = [{transform_indices = @transform_0, window_bounds = array<i64: 8, 256>}, {pipeline_mode = #tpu.pipeline_mode<synchronous>, transform_indices = @transform_1, window_bounds = array<i64: 3, 8, 128>}, {pipeline_mode = #tpu.pipeline_mode<synchronous>, transform_indices = @transform_2, window_bounds = array<i64: 9, 8, 256>}, {transform_indices = @transform_3, window_bounds = array<i64: 8, 256>}]} {
    %0 = tpu.iota {dimensions = array<i32: 0>} : vector<56x256xi32>
    %c0_i32 = arith.constant 0 : i32
    %1 = vector.broadcast %c0_i32 : i32 to vector<56x256xi32>
    %2 = arith.cmpi eq, %0, %1 : vector<56x256xi32>
    %cst = arith.constant 1.000000e+00 : f32
    %cst_0 = arith.constant 0.000000e+00 : f32
    %3 = vector.broadcast %cst : f32 to vector<56x256xf32>
    %4 = vector.broadcast %cst_0 : f32 to vector<56x256xf32>
    %5 = arith.select %2, %3, %4 : vector<56x256xi1>, vector<56x256xf32>
    %c72 = arith.constant 72 : index
    %c0 = arith.constant 0 : index
    %6 = vector.load %arg5[%c72, %c0] : memref<128x256xf32, #tpu.memory_space<vmem>>, vector<56x256xf32>
    tpu.vector_store %arg5[%c72, %c0], %5 {strides = array<i32>} : memref<128x256xf32, #tpu.memory_space<vmem>>, vector<56x256xf32>,
    %c0_1 = arith.constant 0 : index
    %c0_2 = arith.constant 0 : index
    %7 = vector.load %arg1[%c0_1, %c0_2] : memref<8x256xf32, #tpu.memory_space<vmem>>, vector<8x256xf32>
    %c17_i32 = arith.constant 17 : i32
    %8 = tpu.dynamic_rotate %7 by %c17_i32 dim 1 : vector<8x256xf32>, i32 -> vector<8x256xf32>
    %c0_3 = arith.constant 0 : index
    %c0_4 = arith.constant 0 : index
    %c0_5 = arith.constant 0 : index
    %9 = vector.load %arg3[%c0_3, %c0_4, %c0_5] : memref<9x8x256xf32, #tpu.memory_space<vmem>>, vector<1x8x256xf32>
    %10 = vector.shape_cast %9 : vector<1x8x256xf32> to vector<8x256xf32>
    %11 = arith.mulf %8, %10 : vector<8x256xf32>
    %c0_6 = arith.constant 0 : index
    %c0_7 = arith.constant 0 : index
    %12 = vector.load %arg5[%c0_6, %c0_7] : memref<128x256xf32, #tpu.memory_space<vmem>>, vector<8x256xf32>
    tpu.vector_store %arg5[%c0_6, %c0_7], %11 {strides = array<i32>} : memref<128x256xf32, #tpu.memory_space<vmem>>, vector<8x256xf32>,
    %c16_i32 = arith.constant 16 : i32
    %13 = tpu.dynamic_rotate %7 by %c16_i32 dim 1 : vector<8x256xf32>, i32 -> vector<8x256xf32>
    %c1 = arith.constant 1 : index
    %c0_8 = arith.constant 0 : index
    %c0_9 = arith.constant 0 : index
    %14 = vector.load %arg3[%c1, %c0_8, %c0_9] : memref<9x8x256xf32, #tpu.memory_space<vmem>>, vector<1x8x256xf32>
    %15 = vector.shape_cast %14 : vector<1x8x256xf32> to vector<8x256xf32>
    %16 = arith.mulf %13, %15 : vector<8x256xf32>
    %c8 = arith.constant 8 : index
    %c0_10 = arith.constant 0 : index
    %17 = vector.load %arg5[%c8, %c0_10] : memref<128x256xf32, #tpu.memory_space<vmem>>, vector<8x256xf32>
    tpu.vector_store %arg5[%c8, %c0_10], %16 {strides = array<i32>} : memref<128x256xf32, #tpu.memory_space<vmem>>, vector<8x256xf32>,
    %c15_i32 = arith.constant 15 : i32
    %18 = tpu.dynamic_rotate %7 by %c15_i32 dim 1 : vector<8x256xf32>, i32 -> vector<8x256xf32>
    %c2 = arith.constant 2 : index
    %c0_11 = arith.constant 0 : index
    %c0_12 = arith.constant 0 : index
    %19 = vector.load %arg3[%c2, %c0_11, %c0_12] : memref<9x8x256xf32, #tpu.memory_space<vmem>>, vector<1x8x256xf32>
    %20 = vector.shape_cast %19 : vector<1x8x256xf32> to vector<8x256xf32>
    %21 = arith.mulf %18, %20 : vector<8x256xf32>
    %c16 = arith.constant 16 : index
    %c0_13 = arith.constant 0 : index
    %22 = vector.load %arg5[%c16, %c0_13] : memref<128x256xf32, #tpu.memory_space<vmem>>, vector<8x256xf32>
    tpu.vector_store %arg5[%c16, %c0_13], %21 {strides = array<i32>} : memref<128x256xf32, #tpu.memory_space<vmem>>, vector<8x256xf32>,
    %c1_i32 = arith.constant 1 : i32
    %23 = tpu.dynamic_rotate %7 by %c1_i32 dim 1 : vector<8x256xf32>, i32 -> vector<8x256xf32>
    %c3 = arith.constant 3 : index
    %c0_14 = arith.constant 0 : index
    %c0_15 = arith.constant 0 : index
    %24 = vector.load %arg3[%c3, %c0_14, %c0_15] : memref<9x8x256xf32, #tpu.memory_space<vmem>>, vector<1x8x256xf32>
    %25 = vector.shape_cast %24 : vector<1x8x256xf32> to vector<8x256xf32>
    %26 = arith.mulf %23, %25 : vector<8x256xf32>
    %c24 = arith.constant 24 : index
    %c0_16 = arith.constant 0 : index
    %27 = vector.load %arg5[%c24, %c0_16] : memref<128x256xf32, #tpu.memory_space<vmem>>, vector<8x256xf32>
    tpu.vector_store %arg5[%c24, %c0_16], %26 {strides = array<i32>} : memref<128x256xf32, #tpu.memory_space<vmem>>, vector<8x256xf32>,
    %c32 = arith.constant 32 : index
    %c0_17 = arith.constant 0 : index
    %28 = vector.load %arg5[%c32, %c0_17] : memref<128x256xf32, #tpu.memory_space<vmem>>, vector<8x256xf32>
    tpu.vector_store %arg5[%c32, %c0_17], %7 {strides = array<i32>} : memref<128x256xf32, #tpu.memory_space<vmem>>, vector<8x256xf32>,
    %c255_i32 = arith.constant 255 : i32
    %29 = tpu.dynamic_rotate %7 by %c255_i32 dim 1 : vector<8x256xf32>, i32 -> vector<8x256xf32>
    %c5 = arith.constant 5 : index
    %c0_18 = arith.constant 0 : index
    %c0_19 = arith.constant 0 : index
    %30 = vector.load %arg3[%c5, %c0_18, %c0_19] : memref<9x8x256xf32, #tpu.memory_space<vmem>>, vector<1x8x256xf32>
    %31 = vector.shape_cast %30 : vector<1x8x256xf32> to vector<8x256xf32>
    %32 = arith.mulf %29, %31 : vector<8x256xf32>
    %c40 = arith.constant 40 : index
    %c0_20 = arith.constant 0 : index
    %33 = vector.load %arg5[%c40, %c0_20] : memref<128x256xf32, #tpu.memory_space<vmem>>, vector<8x256xf32>
    tpu.vector_store %arg5[%c40, %c0_20], %32 {strides = array<i32>} : memref<128x256xf32, #tpu.memory_space<vmem>>, vector<8x256xf32>,
    %c241_i32 = arith.constant 241 : i32
    %34 = tpu.dynamic_rotate %7 by %c241_i32 dim 1 : vector<8x256xf32>, i32 -> vector<8x256xf32>
    %c6 = arith.constant 6 : index
    %c0_21 = arith.constant 0 : index
    %c0_22 = arith.constant 0 : index
    %35 = vector.load %arg3[%c6, %c0_21, %c0_22] : memref<9x8x256xf32, #tpu.memory_space<vmem>>, vector<1x8x256xf32>
    %36 = vector.shape_cast %35 : vector<1x8x256xf32> to vector<8x256xf32>
    %37 = arith.mulf %34, %36 : vector<8x256xf32>
    %c48 = arith.constant 48 : index
    %c0_23 = arith.constant 0 : index
    %38 = vector.load %arg5[%c48, %c0_23] : memref<128x256xf32, #tpu.memory_space<vmem>>, vector<8x256xf32>
    tpu.vector_store %arg5[%c48, %c0_23], %37 {strides = array<i32>} : memref<128x256xf32, #tpu.memory_space<vmem>>, vector<8x256xf32>,
    %c240_i32 = arith.constant 240 : i32
    %39 = tpu.dynamic_rotate %7 by %c240_i32 dim 1 : vector<8x256xf32>, i32 -> vector<8x256xf32>
    %c7 = arith.constant 7 : index
    %c0_24 = arith.constant 0 : index
    %c0_25 = arith.constant 0 : index
    %40 = vector.load %arg3[%c7, %c0_24, %c0_25] : memref<9x8x256xf32, #tpu.memory_space<vmem>>, vector<1x8x256xf32>
    %41 = vector.shape_cast %40 : vector<1x8x256xf32> to vector<8x256xf32>
    %42 = arith.mulf %39, %41 : vector<8x256xf32>
    %c56 = arith.constant 56 : index
    %c0_26 = arith.constant 0 : index
    %43 = vector.load %arg5[%c56, %c0_26] : memref<128x256xf32, #tpu.memory_space<vmem>>, vector<8x256xf32>
    tpu.vector_store %arg5[%c56, %c0_26], %42 {strides = array<i32>} : memref<128x256xf32, #tpu.memory_space<vmem>>, vector<8x256xf32>,
    %c239_i32 = arith.constant 239 : i32
    %44 = tpu.dynamic_rotate %7 by %c239_i32 dim 1 : vector<8x256xf32>, i32 -> vector<8x256xf32>
    %c8_27 = arith.constant 8 : index
    %c0_28 = arith.constant 0 : index
    %c0_29 = arith.constant 0 : index
    %45 = vector.load %arg3[%c8_27, %c0_28, %c0_29] : memref<9x8x256xf32, #tpu.memory_space<vmem>>, vector<1x8x256xf32>
    %46 = vector.shape_cast %45 : vector<1x8x256xf32> to vector<8x256xf32>
    %47 = arith.mulf %44, %46 : vector<8x256xf32>
    %c64 = arith.constant 64 : index
    %c0_30 = arith.constant 0 : index
    %48 = vector.load %arg5[%c64, %c0_30] : memref<128x256xf32, #tpu.memory_space<vmem>>, vector<8x256xf32>
    tpu.vector_store %arg5[%c64, %c0_30], %47 {strides = array<i32>} : memref<128x256xf32, #tpu.memory_space<vmem>>, vector<8x256xf32>,
    %c0_31 = arith.constant 0 : index
    %c0_32 = arith.constant 0 : index
    %c0_33 = arith.constant 0 : index
    %49 = vector.load %arg2[%c0_31, %c0_32, %c0_33] : memref<3x8x128xf32, #tpu.memory_space<vmem>>, vector<1x8x128xf32>
    %50 = vector.shape_cast %49 : vector<1x8x128xf32> to vector<8x128xf32>
    %c0_34 = arith.constant 0 : index
    %c0_35 = arith.constant 0 : index
    %51 = vector.load %arg5[%c0_34, %c0_35] : memref<128x256xf32, #tpu.memory_space<vmem>>, vector<128x256xf32>
    %cst_36 = arith.constant dense<0.000000e+00> : vector<8x256xf32>
    %52 = tpu.matmul %50, %51, %cst_36 {dimension_numbers = #tpu.dot_dimension_numbers<[1], [0], [0], [1], [0, 0, 1, 1], [], []>} : vector<8x128xf32>, vector<128x256xf32>, vector<8x256xf32> -> vector<8x256xf32>
    %cst_37 = arith.constant 0.000000e+00 : f32
    %53 = vector.broadcast %cst_37 : f32 to vector<8x256xf32>
    %54 = arith.cmpf ogt, %52, %53 : vector<8x256xf32>
    %55 = math.exp %52 : vector<8x256xf32>
    %cst_38 = arith.constant 1.000000e+00 : f32
    %56 = vector.broadcast %cst_38 : f32 to vector<8x256xf32>
    %57 = arith.subf %55, %56 : vector<8x256xf32>
    %cst_39 = arith.constant 1.67326319 : f32
    %58 = vector.broadcast %cst_39 : f32 to vector<8x256xf32>
    %59 = arith.mulf %58, %57 : vector<8x256xf32>
    %60 = arith.select %54, %52, %59 : vector<8x256xi1>, vector<8x256xf32>
    %cst_40 = arith.constant 1.05070102 : f32
    %61 = vector.broadcast %cst_40 : f32 to vector<8x256xf32>
    %62 = arith.mulf %61, %60 : vector<8x256xf32>
    %c17_i32_41 = arith.constant 17 : i32
    %63 = tpu.dynamic_rotate %62 by %c17_i32_41 dim 1 : vector<8x256xf32>, i32 -> vector<8x256xf32>
    %c0_42 = arith.constant 0 : index
    %c0_43 = arith.constant 0 : index
    %c0_44 = arith.constant 0 : index
    %64 = vector.load %arg3[%c0_42, %c0_43, %c0_44] : memref<9x8x256xf32, #tpu.memory_space<vmem>>, vector<1x8x256xf32>
    %65 = vector.shape_cast %64 : vector<1x8x256xf32> to vector<8x256xf32>
    %66 = arith.mulf %63, %65 : vector<8x256xf32>
    %c0_45 = arith.constant 0 : index
    %c0_46 = arith.constant 0 : index
    %67 = vector.load %arg5[%c0_45, %c0_46] : memref<128x256xf32, #tpu.memory_space<vmem>>, vector<8x256xf32>
    tpu.vector_store %arg5[%c0_45, %c0_46], %66 {strides = array<i32>} : memref<128x256xf32, #tpu.memory_space<vmem>>, vector<8x256xf32>,
    %c16_i32_47 = arith.constant 16 : i32
    %68 = tpu.dynamic_rotate %62 by %c16_i32_47 dim 1 : vector<8x256xf32>, i32 -> vector<8x256xf32>
    %c1_48 = arith.constant 1 : index
    %c0_49 = arith.constant 0 : index
    %c0_50 = arith.constant 0 : index
    %69 = vector.load %arg3[%c1_48, %c0_49, %c0_50] : memref<9x8x256xf32, #tpu.memory_space<vmem>>, vector<1x8x256xf32>
    %70 = vector.shape_cast %69 : vector<1x8x256xf32> to vector<8x256xf32>
    %71 = arith.mulf %68, %70 : vector<8x256xf32>
    %c8_51 = arith.constant 8 : index
    %c0_52 = arith.constant 0 : index
    %72 = vector.load %arg5[%c8_51, %c0_52] : memref<128x256xf32, #tpu.memory_space<vmem>>, vector<8x256xf32>
    tpu.vector_store %arg5[%c8_51, %c0_52], %71 {strides = array<i32>} : memref<128x256xf32, #tpu.memory_space<vmem>>, vector<8x256xf32>,
    %c15_i32_53 = arith.constant 15 : i32
    %73 = tpu.dynamic_rotate %62 by %c15_i32_53 dim 1 : vector<8x256xf32>, i32 -> vector<8x256xf32>
    %c2_54 = arith.constant 2 : index
    %c0_55 = arith.constant 0 : index
    %c0_56 = arith.constant 0 : index
    %74 = vector.load %arg3[%c2_54, %c0_55, %c0_56] : memref<9x8x256xf32, #tpu.memory_space<vmem>>, vector<1x8x256xf32>
    %75 = vector.shape_cast %74 : vector<1x8x256xf32> to vector<8x256xf32>
    %76 = arith.mulf %73, %75 : vector<8x256xf32>
    %c16_57 = arith.constant 16 : index
    %c0_58 = arith.constant 0 : index
    %77 = vector.load %arg5[%c16_57, %c0_58] : memref<128x256xf32, #tpu.memory_space<vmem>>, vector<8x256xf32>
    tpu.vector_store %arg5[%c16_57, %c0_58], %76 {strides = array<i32>} : memref<128x256xf32, #tpu.memory_space<vmem>>, vector<8x256xf32>,
    %c1_i32_59 = arith.constant 1 : i32
    %78 = tpu.dynamic_rotate %62 by %c1_i32_59 dim 1 : vector<8x256xf32>, i32 -> vector<8x256xf32>
    %c3_60 = arith.constant 3 : index
    %c0_61 = arith.constant 0 : index
    %c0_62 = arith.constant 0 : index
    %79 = vector.load %arg3[%c3_60, %c0_61, %c0_62] : memref<9x8x256xf32, #tpu.memory_space<vmem>>, vector<1x8x256xf32>
    %80 = vector.shape_cast %79 : vector<1x8x256xf32> to vector<8x256xf32>
    %81 = arith.mulf %78, %80 : vector<8x256xf32>
    %c24_63 = arith.constant 24 : index
    %c0_64 = arith.constant 0 : index
    %82 = vector.load %arg5[%c24_63, %c0_64] : memref<128x256xf32, #tpu.memory_space<vmem>>, vector<8x256xf32>
    tpu.vector_store %arg5[%c24_63, %c0_64], %81 {strides = array<i32>} : memref<128x256xf32, #tpu.memory_space<vmem>>, vector<8x256xf32>,
    %c32_65 = arith.constant 32 : index
    %c0_66 = arith.constant 0 : index
    %83 = vector.load %arg5[%c32_65, %c0_66] : memref<128x256xf32, #tpu.memory_space<vmem>>, vector<8x256xf32>
    tpu.vector_store %arg5[%c32_65, %c0_66], %62 {strides = array<i32>} : memref<128x256xf32, #tpu.memory_space<vmem>>, vector<8x256xf32>,
    %c255_i32_67 = arith.constant 255 : i32
    %84 = tpu.dynamic_rotate %62 by %c255_i32_67 dim 1 : vector<8x256xf32>, i32 -> vector<8x256xf32>
    %c5_68 = arith.constant 5 : index
    %c0_69 = arith.constant 0 : index
    %c0_70 = arith.constant 0 : index
    %85 = vector.load %arg3[%c5_68, %c0_69, %c0_70] : memref<9x8x256xf32, #tpu.memory_space<vmem>>, vector<1x8x256xf32>
    %86 = vector.shape_cast %85 : vector<1x8x256xf32> to vector<8x256xf32>
    %87 = arith.mulf %84, %86 : vector<8x256xf32>
    %c40_71 = arith.constant 40 : index
    %c0_72 = arith.constant 0 : index
    %88 = vector.load %arg5[%c40_71, %c0_72] : memref<128x256xf32, #tpu.memory_space<vmem>>, vector<8x256xf32>
    tpu.vector_store %arg5[%c40_71, %c0_72], %87 {strides = array<i32>} : memref<128x256xf32, #tpu.memory_space<vmem>>, vector<8x256xf32>,
    %c241_i32_73 = arith.constant 241 : i32
    %89 = tpu.dynamic_rotate %62 by %c241_i32_73 dim 1 : vector<8x256xf32>, i32 -> vector<8x256xf32>
    %c6_74 = arith.constant 6 : index
    %c0_75 = arith.constant 0 : index
    %c0_76 = arith.constant 0 : index
    %90 = vector.load %arg3[%c6_74, %c0_75, %c0_76] : memref<9x8x256xf32, #tpu.memory_space<vmem>>, vector<1x8x256xf32>
    %91 = vector.shape_cast %90 : vector<1x8x256xf32> to vector<8x256xf32>
    %92 = arith.mulf %89, %91 : vector<8x256xf32>
    %c48_77 = arith.constant 48 : index
    %c0_78 = arith.constant 0 : index
    %93 = vector.load %arg5[%c48_77, %c0_78] : memref<128x256xf32, #tpu.memory_space<vmem>>, vector<8x256xf32>
    tpu.vector_store %arg5[%c48_77, %c0_78], %92 {strides = array<i32>} : memref<128x256xf32, #tpu.memory_space<vmem>>, vector<8x256xf32>,
    %c240_i32_79 = arith.constant 240 : i32
    %94 = tpu.dynamic_rotate %62 by %c240_i32_79 dim 1 : vector<8x256xf32>, i32 -> vector<8x256xf32>
    %c7_80 = arith.constant 7 : index
    %c0_81 = arith.constant 0 : index
    %c0_82 = arith.constant 0 : index
    %95 = vector.load %arg3[%c7_80, %c0_81, %c0_82] : memref<9x8x256xf32, #tpu.memory_space<vmem>>, vector<1x8x256xf32>
    %96 = vector.shape_cast %95 : vector<1x8x256xf32> to vector<8x256xf32>
    %97 = arith.mulf %94, %96 : vector<8x256xf32>
    %c56_83 = arith.constant 56 : index
    %c0_84 = arith.constant 0 : index
    %98 = vector.load %arg5[%c56_83, %c0_84] : memref<128x256xf32, #tpu.memory_space<vmem>>, vector<8x256xf32>
    tpu.vector_store %arg5[%c56_83, %c0_84], %97 {strides = array<i32>} : memref<128x256xf32, #tpu.memory_space<vmem>>, vector<8x256xf32>,
    %c239_i32_85 = arith.constant 239 : i32
    %99 = tpu.dynamic_rotate %62 by %c239_i32_85 dim 1 : vector<8x256xf32>, i32 -> vector<8x256xf32>
    %c8_86 = arith.constant 8 : index
    %c0_87 = arith.constant 0 : index
    %c0_88 = arith.constant 0 : index
    %100 = vector.load %arg3[%c8_86, %c0_87, %c0_88] : memref<9x8x256xf32, #tpu.memory_space<vmem>>, vector<1x8x256xf32>
    %101 = vector.shape_cast %100 : vector<1x8x256xf32> to vector<8x256xf32>
    %102 = arith.mulf %99, %101 : vector<8x256xf32>
    %c64_89 = arith.constant 64 : index
    %c0_90 = arith.constant 0 : index
    %103 = vector.load %arg5[%c64_89, %c0_90] : memref<128x256xf32, #tpu.memory_space<vmem>>, vector<8x256xf32>
    tpu.vector_store %arg5[%c64_89, %c0_90], %102 {strides = array<i32>} : memref<128x256xf32, #tpu.memory_space<vmem>>, vector<8x256xf32>,
    %c1_91 = arith.constant 1 : index
    %c0_92 = arith.constant 0 : index
    %c0_93 = arith.constant 0 : index
    %104 = vector.load %arg2[%c1_91, %c0_92, %c0_93] : memref<3x8x128xf32, #tpu.memory_space<vmem>>, vector<1x8x128xf32>
    %105 = vector.shape_cast %104 : vector<1x8x128xf32> to vector<8x128xf32>
    %c0_94 = arith.constant 0 : index
    %c0_95 = arith.constant 0 : index
    %106 = vector.load %arg5[%c0_94, %c0_95] : memref<128x256xf32, #tpu.memory_space<vmem>>, vector<128x256xf32>
    %cst_96 = arith.constant dense<0.000000e+00> : vector<8x256xf32>
    %107 = tpu.matmul %105, %106, %cst_96 {dimension_numbers = #tpu.dot_dimension_numbers<[1], [0], [0], [1], [0, 0, 1, 1], [], []>} : vector<8x128xf32>, vector<128x256xf32>, vector<8x256xf32> -> vector<8x256xf32>
    %cst_97 = arith.constant 0.000000e+00 : f32
    %108 = vector.broadcast %cst_97 : f32 to vector<8x256xf32>
    %109 = arith.cmpf ogt, %107, %108 : vector<8x256xf32>
    %110 = math.exp %107 : vector<8x256xf32>
    %cst_98 = arith.constant 1.000000e+00 : f32
    %111 = vector.broadcast %cst_98 : f32 to vector<8x256xf32>
    %112 = arith.subf %110, %111 : vector<8x256xf32>
    %cst_99 = arith.constant 1.67326319 : f32
    %113 = vector.broadcast %cst_99 : f32 to vector<8x256xf32>
    %114 = arith.mulf %113, %112 : vector<8x256xf32>
    %115 = arith.select %109, %107, %114 : vector<8x256xi1>, vector<8x256xf32>
    %cst_100 = arith.constant 1.05070102 : f32
    %116 = vector.broadcast %cst_100 : f32 to vector<8x256xf32>
    %117 = arith.mulf %116, %115 : vector<8x256xf32>
    %c17_i32_101 = arith.constant 17 : i32
    %118 = tpu.dynamic_rotate %117 by %c17_i32_101 dim 1 : vector<8x256xf32>, i32 -> vector<8x256xf32>
    %c0_102 = arith.constant 0 : index
    %c0_103 = arith.constant 0 : index
    %c0_104 = arith.constant 0 : index
    %119 = vector.load %arg3[%c0_102, %c0_103, %c0_104] : memref<9x8x256xf32, #tpu.memory_space<vmem>>, vector<1x8x256xf32>
    %120 = vector.shape_cast %119 : vector<1x8x256xf32> to vector<8x256xf32>
    %121 = arith.mulf %118, %120 : vector<8x256xf32>
    %c0_105 = arith.constant 0 : index
    %c0_106 = arith.constant 0 : index
    %122 = vector.load %arg5[%c0_105, %c0_106] : memref<128x256xf32, #tpu.memory_space<vmem>>, vector<8x256xf32>
    tpu.vector_store %arg5[%c0_105, %c0_106], %121 {strides = array<i32>} : memref<128x256xf32, #tpu.memory_space<vmem>>, vector<8x256xf32>,
    %c16_i32_107 = arith.constant 16 : i32
    %123 = tpu.dynamic_rotate %117 by %c16_i32_107 dim 1 : vector<8x256xf32>, i32 -> vector<8x256xf32>
    %c1_108 = arith.constant 1 : index
    %c0_109 = arith.constant 0 : index
    %c0_110 = arith.constant 0 : index
    %124 = vector.load %arg3[%c1_108, %c0_109, %c0_110] : memref<9x8x256xf32, #tpu.memory_space<vmem>>, vector<1x8x256xf32>
    %125 = vector.shape_cast %124 : vector<1x8x256xf32> to vector<8x256xf32>
    %126 = arith.mulf %123, %125 : vector<8x256xf32>
    %c8_111 = arith.constant 8 : index
    %c0_112 = arith.constant 0 : index
    %127 = vector.load %arg5[%c8_111, %c0_112] : memref<128x256xf32, #tpu.memory_space<vmem>>, vector<8x256xf32>
    tpu.vector_store %arg5[%c8_111, %c0_112], %126 {strides = array<i32>} : memref<128x256xf32, #tpu.memory_space<vmem>>, vector<8x256xf32>,
    %c15_i32_113 = arith.constant 15 : i32
    %128 = tpu.dynamic_rotate %117 by %c15_i32_113 dim 1 : vector<8x256xf32>, i32 -> vector<8x256xf32>
    %c2_114 = arith.constant 2 : index
    %c0_115 = arith.constant 0 : index
    %c0_116 = arith.constant 0 : index
    %129 = vector.load %arg3[%c2_114, %c0_115, %c0_116] : memref<9x8x256xf32, #tpu.memory_space<vmem>>, vector<1x8x256xf32>
    %130 = vector.shape_cast %129 : vector<1x8x256xf32> to vector<8x256xf32>
    %131 = arith.mulf %128, %130 : vector<8x256xf32>
    %c16_117 = arith.constant 16 : index
    %c0_118 = arith.constant 0 : index
    %132 = vector.load %arg5[%c16_117, %c0_118] : memref<128x256xf32, #tpu.memory_space<vmem>>, vector<8x256xf32>
    tpu.vector_store %arg5[%c16_117, %c0_118], %131 {strides = array<i32>} : memref<128x256xf32, #tpu.memory_space<vmem>>, vector<8x256xf32>,
    %c1_i32_119 = arith.constant 1 : i32
    %133 = tpu.dynamic_rotate %117 by %c1_i32_119 dim 1 : vector<8x256xf32>, i32 -> vector<8x256xf32>
    %c3_120 = arith.constant 3 : index
    %c0_121 = arith.constant 0 : index
    %c0_122 = arith.constant 0 : index
    %134 = vector.load %arg3[%c3_120, %c0_121, %c0_122] : memref<9x8x256xf32, #tpu.memory_space<vmem>>, vector<1x8x256xf32>
    %135 = vector.shape_cast %134 : vector<1x8x256xf32> to vector<8x256xf32>
    %136 = arith.mulf %133, %135 : vector<8x256xf32>
    %c24_123 = arith.constant 24 : index
    %c0_124 = arith.constant 0 : index
    %137 = vector.load %arg5[%c24_123, %c0_124] : memref<128x256xf32, #tpu.memory_space<vmem>>, vector<8x256xf32>
    tpu.vector_store %arg5[%c24_123, %c0_124], %136 {strides = array<i32>} : memref<128x256xf32, #tpu.memory_space<vmem>>, vector<8x256xf32>,
    %c32_125 = arith.constant 32 : index
    %c0_126 = arith.constant 0 : index
    %138 = vector.load %arg5[%c32_125, %c0_126] : memref<128x256xf32, #tpu.memory_space<vmem>>, vector<8x256xf32>
    tpu.vector_store %arg5[%c32_125, %c0_126], %117 {strides = array<i32>} : memref<128x256xf32, #tpu.memory_space<vmem>>, vector<8x256xf32>,
    %c255_i32_127 = arith.constant 255 : i32
    %139 = tpu.dynamic_rotate %117 by %c255_i32_127 dim 1 : vector<8x256xf32>, i32 -> vector<8x256xf32>
    %c5_128 = arith.constant 5 : index
    %c0_129 = arith.constant 0 : index
    %c0_130 = arith.constant 0 : index
    %140 = vector.load %arg3[%c5_128, %c0_129, %c0_130] : memref<9x8x256xf32, #tpu.memory_space<vmem>>, vector<1x8x256xf32>
    %141 = vector.shape_cast %140 : vector<1x8x256xf32> to vector<8x256xf32>
    %142 = arith.mulf %139, %141 : vector<8x256xf32>
    %c40_131 = arith.constant 40 : index
    %c0_132 = arith.constant 0 : index
    %143 = vector.load %arg5[%c40_131, %c0_132] : memref<128x256xf32, #tpu.memory_space<vmem>>, vector<8x256xf32>
    tpu.vector_store %arg5[%c40_131, %c0_132], %142 {strides = array<i32>} : memref<128x256xf32, #tpu.memory_space<vmem>>, vector<8x256xf32>,
    %c241_i32_133 = arith.constant 241 : i32
    %144 = tpu.dynamic_rotate %117 by %c241_i32_133 dim 1 : vector<8x256xf32>, i32 -> vector<8x256xf32>
    %c6_134 = arith.constant 6 : index
    %c0_135 = arith.constant 0 : index
    %c0_136 = arith.constant 0 : index
    %145 = vector.load %arg3[%c6_134, %c0_135, %c0_136] : memref<9x8x256xf32, #tpu.memory_space<vmem>>, vector<1x8x256xf32>
    %146 = vector.shape_cast %145 : vector<1x8x256xf32> to vector<8x256xf32>
    %147 = arith.mulf %144, %146 : vector<8x256xf32>
    %c48_137 = arith.constant 48 : index
    %c0_138 = arith.constant 0 : index
    %148 = vector.load %arg5[%c48_137, %c0_138] : memref<128x256xf32, #tpu.memory_space<vmem>>, vector<8x256xf32>
    tpu.vector_store %arg5[%c48_137, %c0_138], %147 {strides = array<i32>} : memref<128x256xf32, #tpu.memory_space<vmem>>, vector<8x256xf32>,
    %c240_i32_139 = arith.constant 240 : i32
    %149 = tpu.dynamic_rotate %117 by %c240_i32_139 dim 1 : vector<8x256xf32>, i32 -> vector<8x256xf32>
    %c7_140 = arith.constant 7 : index
    %c0_141 = arith.constant 0 : index
    %c0_142 = arith.constant 0 : index
    %150 = vector.load %arg3[%c7_140, %c0_141, %c0_142] : memref<9x8x256xf32, #tpu.memory_space<vmem>>, vector<1x8x256xf32>
    %151 = vector.shape_cast %150 : vector<1x8x256xf32> to vector<8x256xf32>
    %152 = arith.mulf %149, %151 : vector<8x256xf32>
    %c56_143 = arith.constant 56 : index
    %c0_144 = arith.constant 0 : index
    %153 = vector.load %arg5[%c56_143, %c0_144] : memref<128x256xf32, #tpu.memory_space<vmem>>, vector<8x256xf32>
    tpu.vector_store %arg5[%c56_143, %c0_144], %152 {strides = array<i32>} : memref<128x256xf32, #tpu.memory_space<vmem>>, vector<8x256xf32>,
    %c239_i32_145 = arith.constant 239 : i32
    %154 = tpu.dynamic_rotate %117 by %c239_i32_145 dim 1 : vector<8x256xf32>, i32 -> vector<8x256xf32>
    %c8_146 = arith.constant 8 : index
    %c0_147 = arith.constant 0 : index
    %c0_148 = arith.constant 0 : index
    %155 = vector.load %arg3[%c8_146, %c0_147, %c0_148] : memref<9x8x256xf32, #tpu.memory_space<vmem>>, vector<1x8x256xf32>
    %156 = vector.shape_cast %155 : vector<1x8x256xf32> to vector<8x256xf32>
    %157 = arith.mulf %154, %156 : vector<8x256xf32>
    %c64_149 = arith.constant 64 : index
    %c0_150 = arith.constant 0 : index
    %158 = vector.load %arg5[%c64_149, %c0_150] : memref<128x256xf32, #tpu.memory_space<vmem>>, vector<8x256xf32>
    tpu.vector_store %arg5[%c64_149, %c0_150], %157 {strides = array<i32>} : memref<128x256xf32, #tpu.memory_space<vmem>>, vector<8x256xf32>,
    %c2_151 = arith.constant 2 : index
    %c0_152 = arith.constant 0 : index
    %c0_153 = arith.constant 0 : index
    %159 = vector.load %arg2[%c2_151, %c0_152, %c0_153] : memref<3x8x128xf32, #tpu.memory_space<vmem>>, vector<1x8x128xf32>
    %160 = vector.shape_cast %159 : vector<1x8x128xf32> to vector<8x128xf32>
    %c0_154 = arith.constant 0 : index
    %c0_155 = arith.constant 0 : index
    %161 = vector.load %arg5[%c0_154, %c0_155] : memref<128x256xf32, #tpu.memory_space<vmem>>, vector<128x256xf32>
    %cst_156 = arith.constant dense<0.000000e+00> : vector<8x256xf32>
    %162 = tpu.matmul %160, %161, %cst_156 {dimension_numbers = #tpu.dot_dimension_numbers<[1], [0], [0], [1], [0, 0, 1, 1], [], []>} : vector<8x128xf32>, vector<128x256xf32>, vector<8x256xf32> -> vector<8x256xf32>
    %c0_157 = arith.constant 0 : index
    %c0_158 = arith.constant 0 : index
    %163 = vector.load %arg4[%c0_157, %c0_158] : memref<8x256xf32, #tpu.memory_space<vmem>>, vector<8x256xf32>
    tpu.vector_store %arg4[%c0_157, %c0_158], %162 {strides = array<i32>} : memref<8x256xf32, #tpu.memory_space<vmem>>, vector<8x256xf32>,
    return
  }
  func.func @transform_0(%arg0: i32) -> (i32, i32) {
    %c0_i32 = arith.constant 0 : i32
    %c0_i32_0 = arith.constant 0 : i32
    return %c0_i32, %arg0 : i32, i32
  }
  func.func @transform_1(%arg0: i32) -> (i32, i32, i32) {
    %c0_i32 = arith.constant 0 : i32
    %c0_i32_0 = arith.constant 0 : i32
    %c0_i32_1 = arith.constant 0 : i32
    %c0_i32_2 = arith.constant 0 : i32
    return %c0_i32, %c0_i32_0, %c0_i32_1 : i32, i32, i32
  }
  func.func @transform_2(%arg0: i32) -> (i32, i32, i32) {
    %c0_i32 = arith.constant 0 : i32
    %c0_i32_0 = arith.constant 0 : i32
    %c0_i32_1 = arith.constant 0 : i32
    %c0_i32_2 = arith.constant 0 : i32
    return %c0_i32, %c0_i32_0, %c0_i32_1 : i32, i32, i32
  }
  func.func @transform_3(%arg0: i32) -> (i32, i32) {
    %c0_i32 = arith.constant 0 : i32
    %c0_i32_0 = arith.constant 0 : i32
    return %c0_i32, %arg0 : i32, i32
  }
}

</mosaic_0001>

<bundles_post_ra>
// kernel: cnn_conv_stack.1
= control target key start
LH: loop header
LB: loop body
LE: loop exit
PB: predicated region body
PF: predicated region fallthrough
CT: control target
= control target key end

     0   :  { %s1120_s12 = smov 0   ;;  %s1506_s0 = inlined_call_operand.vmem [shape: f32[8,512], index: 0, kind: input, shape index: {}]   ;;  %s1507_s1 = inlined_call_operand.vmem [shape: f32[3,8,128], index: 1, kind: input, shape index: {}]   ;;  %s1508_s2 = inlined_call_operand.vmem [shape: f32[9,8,256], index: 2, kind: input, shape index: {}]   ;;  %s1509_s3 = inlined_call_operand.vmem [shape: f32[8,512], index: 3, kind: output, shape index: {}]  }
   0x1 LB: > { %s923_s13 = sadd.s32 4294967295, %s1087_s12   ;;  %p927_p0 = scmp.ge.s32.totalorder %s1087_s12, 1  ;;  %s1087_s12 = sphi %s1120_s12, %s13_s12  }
   0x2   : > { %p138_p1 = scmp.lt.s32.totalorder %s1087_s12, 3 }
   0x4   : > { %p139_p2 = pnand %p927_p0, %p138_p1 }
   0x5   : > { %s928_s14 = sshll.u32 (!%p139_p2), %s923_s13, 1  ;;  %s1089_s19 = smov (!%p139_p2), 16   ;;  %v1095_v2 = vmov (!%p139_p2), 0.0   ;;  %v174_v3 = vlaneseq (!%p139_p2)  ;;  %v1181_v7 = vld [vmem:[%s1508_s2 + $0x10] sm:$0xff] (!%p139_p2)  ;;  %v1187_v8 = vld [vmem:[%s1508_s2] sm:$0xff] (!%p139_p2)  ;;  %v1192_v9 = vld [vmem:[%s1508_s2 + $0x8] sm:$0xff] (!%p139_p2) }
   0x6   : > { %142 = sbr.rel (%p139_p2) target bundleno = 1153 (0x481), region = 32  ;;  %p163_p3 = scmp.lt.s32.totalorder (!%p139_p2), %s928_s14, 3  ;;  %424 = vmatprep.mubr.f32.mxu0 (!%p139_p2), %v1095_v2  ;;  %641 = vmatprep.mubr.f32.mxu1 (!%p139_p2), %v1095_v2  ;;  %v1197_v10 = vld [vmem:[%s1508_s2 + $0x18] sm:$0xff] (!%p139_p2)  ;;  %v1215_v25 = vld [vmem:[%s1508_s2 + $0x20] sm:$0xff] (!%p139_p2)  ;;  %v1221_v26 = vld [vmem:[%s1508_s2 + $0x28] sm:$0xff] (!%p139_p2)  ;;  %vm1098_vm9 = vmmov (!%p139_p2), 1  }
   0x7   : > { %s1090_s20 = smov (!%p139_p2), 17   ;;  %s1091_s21 = smov (!%p139_p2), 15   ;;  %v1175_v4 = vand.u32 (!%p139_p2), 127, %v174_v3  ;;  %v1230_v29 = vld [vmem:[%s1508_s2 + $0x30] sm:$0xff] (!%p139_p2)  ;;  %v1235_v30 = vld [vmem:[%s1508_s2 + $0x38] sm:$0xff] (!%p139_p2)  ;;  %v1268_v53 = vld [vmem:[%s1508_s2 + $0x60] sm:$0xff] (!%p139_p2) }
   0x8   : > { %s1092_s22 = smov (!%p139_p2), 1   ;;  %s1093_s23 = smov (!%p139_p2), 127   ;;  %v1249_v39 = vld [vmem:[%s1508_s2 + $0x50] sm:$0xff] (!%p139_p2)  ;;  %v1254_v40 = vld [vmem:[%s1508_s2 + $0x58] sm:$0xff] (!%p139_p2)  ;;  %v1274_v54 = vld [vmem:[%s1508_s2 + $0x68] sm:$0xff] (!%p139_p2)  ;;  %v175_v61 = vshrl.u32 (!%p139_p2), %v174_v3, 7 }
   0x9   : > { %s1094_s24 = smov (!%p139_p2), 113   ;;  %s1096_s25 = smov (!%p139_p2), 112   ;;  %vm231_vm0 = vcmp.lt.s32.totalorder (!%p139_p2), %v1175_v4, 16  ;;  %vm218_vm1 = vcmp.lt.s32.totalorder (!%p139_p2), %v1175_v4, 17  ;;  %vm245_vm2 = vcmp.lt.s32.totalorder (!%p139_p2), %v1175_v4, 15  ;;  %vm259_vm3 = vcmp.lt.s32.totalorder (!%p139_p2), %v1175_v4, 1 }
   0xa   : > { %s1097_s26 = smov (!%p139_p2), 111   ;;  %vm275_vm4 = vcmp.lt.s32.totalorder (!%p139_p2), %v1175_v4, 127  ;;  %vm289_vm5 = vcmp.lt.s32.totalorder (!%p139_p2), %v1175_v4, 113  ;;  %vm303_vm6 = vcmp.lt.s32.totalorder (!%p139_p2), %v1175_v4, 112  ;;  %v1283_v57 = vld [vmem:[%s1508_s2 + $0x70] sm:$0xff] (!%p139_p2)  ;;  %v1288_v58 = vld [vmem:[%s1508_s2 + $0x78] sm:$0xff] (!%p139_p2) }
   0xb   : > { %vm317_vm7 = vcmp.lt.s32.totalorder (!%p139_p2), %v1175_v4, 111  ;;  %v1303_v3 = vld [vmem:[%s1508_s2 + $0x80] sm:$0xff] (!%p139_p2)  ;;  %vm182_vm8 = vcmp.eq.s32.totalorder (!%p139_p2), %v175_v61, 0  ;;  %v979_v4 = vld [vmem:[%s1507_s1 + $0x10] sm:$0xff] (!%p139_p2) }
   0xc   : > { %vm1316_vm10 = vmpackc.low (!%p139_p2), %vm182_vm8, %vm1098_vm9 }
   0xd   : > { %s1513_s14 = smov (!%p163_p3, %s928_s14), 3 }
   0xe   : > { %s929_s15 = sshll.u32 %s1513_s14, 3 }
   0xf   : > { %s166_s18 = scalar_lea.vmem %s1506_s0, %s929_s15 }
  0x10   : > { %v1136_v0 = vld [vmem:[%s166_s18] sm:$0xff]  ;;  %v1142_v1 = vld [vmem:[%s166_s18 + $0x8] sm:$0xff] }
  0x11   : > { %227 = vrot.lane.b32.xlu1 %v1136_v0, %s1089_s19  ;;  %212 = vrot.lane.b32.xlu0 %v1136_v0, %s1090_s20 }
  0x15   : > { %229 = vrot.lane.b32.xlu1 %v1142_v1, %s1089_s19  ;;  %214 = vrot.lane.b32.xlu0 %v1142_v1, %s1090_s20 }
  0x19   : > { %243 = vrot.lane.b32.xlu1 %v1142_v1, %s1091_s21  ;;  %241 = vrot.lane.b32.xlu0 %v1136_v0, %s1091_s21 }
  0x1d   : > { %257 = vrot.lane.b32.xlu1 %v1142_v1, %s1092_s22  ;;  %255 = vrot.lane.b32.xlu0 %v1136_v0, %s1092_s22 }
  0x21   : > { %273 = vrot.lane.b32.xlu1 %v1142_v1, %s1093_s23  ;;  %271 = vrot.lane.b32.xlu0 %v1136_v0, %s1093_s23 }
  0x25   : > { %287 = vrot.lane.b32.xlu1 %v1142_v1, %s1094_s24  ;;  %285 = vrot.lane.b32.xlu0 %v1136_v0, %s1094_s24 }
  0x29   : > { %301 = vrot.lane.b32.xlu1 %v1142_v1, %s1096_s25  ;;  %299 = vrot.lane.b32.xlu0 %v1136_v0, %s1096_s25 }
  0x2d   : > { %315 = vrot.lane.b32.xlu1 %v1142_v1, %s1097_s26  ;;  %313 = vrot.lane.b32.xlu0 %v1136_v0, %s1097_s26 }
  0x83   : > { %v228_v5 = vpop.permute.xlu1 %227  ;;  %v213_v6 = vpop.permute.xlu0 %212 }
  0x87   : > { %v230_v11 = vpop.permute.xlu1 %229  ;;  %v215_v12 = vpop.permute.xlu0 %214 }
  0x88   : > { %v232_v13 = vsel %vm231_vm0, %v228_v5, %v230_v11  ;;  %v233_v14 = vsel %vm231_vm0, %v230_v11, %v228_v5  ;;  %v219_v15 = vsel %vm218_vm1, %v213_v6, %v215_v12  ;;  %v220_v16 = vsel %vm218_vm1, %v215_v12, %v213_v6  ;;  %v1308_v11 = vld [vmem:[%s1508_s2 + $0x88] sm:$0xff] }
  0x89   : > { %v237_v17 = vmul.f32 %v1181_v7, %v233_v14  ;;  %v223_v18 = vmul.f32 %v1187_v8, %v220_v16  ;;  %v224_v19 = vmul.f32 %v1192_v9, %v219_v15  ;;  %v238_v20 = vmul.f32 %v1197_v10, %v232_v13 }
  0x8b   : > { %v244_v21 = vpop.permute.xlu1 %243  ;;  %v242_v22 = vpop.permute.xlu0 %241  ;;  %v988_v23 = vpack.c.bf16 %v238_v20, %v224_v19  ;;  %v990_v24 = vpack.c.bf16 %v237_v17, %v223_v18 }
  0x8c   : > { %v246_v27 = vsel %vm245_vm2, %v242_v22, %v244_v21  ;;  %v247_v28 = vsel %vm245_vm2, %v244_v21, %v242_v22  ;;  %v1099_v21 = vmov 1.0  }
  0x8d   : > { %989 = vmatprep.subr.bf16.mxu0 %v988_v23  ;;  %v251_v35 = vmul.f32 %v1215_v25, %v247_v28  ;;  %v252_v36 = vmul.f32 %v1221_v26, %v246_v27 }
  0x8e   : > { %991 = vmatpush1.bf16.msra.mxu0 %v990_v24  ;;  %v327_v24 = vld [vmem:[%s1507_s1] sm:$0xff] }
  0x8f   : > { %v258_v31 = vpop.permute.xlu1 %257  ;;  %v256_v32 = vpop.permute.xlu0 %255 }
  0x90   : > { %v260_v33 = vsel %vm259_vm3, %v256_v32, %v258_v31  ;;  %v261_v34 = vsel %vm259_vm3, %v258_v31, %v256_v32 }
  0x91   : > { %v265_v37 = vmul.f32 %v1230_v29, %v261_v34  ;;  %v266_v38 = vmul.f32 %v1235_v30, %v260_v33 }
  0x93   : > { %v274_v41 = vpop.permute.xlu1 %273  ;;  %v272_v42 = vpop.permute.xlu0 %271  ;;  %v992_v43 = vpack.c.bf16 %v266_v38, %v252_v36  ;;  %v994_v44 = vpack.c.bf16 %v265_v37, %v251_v35 }
  0x94   : > { %v276_v45 = vsel %vm275_vm4, %v272_v42, %v274_v41  ;;  %v277_v46 = vsel %vm275_vm4, %v274_v41, %v272_v42 }
  0x95   : > { %v281_v47 = vmul.f32 %v1249_v39, %v276_v45  ;;  %v282_v48 = vmul.f32 %v1254_v40, %v277_v46  ;;  %993 = vmatprep.subr.bf16.mxu0 %v992_v43 }
  0x96   : > { %995 = vmatpush1.bf16.msra.mxu0 %v994_v44 }
  0x97   : > { %v288_v49 = vpop.permute.xlu1 %287  ;;  %v286_v50 = vpop.permute.xlu0 %285  ;;  %v996_v51 = vpack.c.bf16 %v282_v48, %v1142_v1  ;;  %v998_v52 = vpack.c.bf16 %v281_v47, %v1136_v0 }
  0x98   : > { %v290_v55 = vsel %vm289_vm5, %v286_v50, %v288_v49  ;;  %v291_v56 = vsel %vm289_vm5, %v288_v49, %v286_v50 }
  0x99   : > { %997 = vmatprep.subr.bf16.mxu0 %v996_v51  ;;  %v295_v0 = vmul.f32 %v1268_v53, %v290_v55  ;;  %v296_v1 = vmul.f32 %v1274_v54, %v291_v56 }
  0x9a   : > { %999 = vmatpush1.bf16.msra.mxu0 %v998_v52 }
  0x9b   : > { %v302_v59 = vpop.permute.xlu1 %301  ;;  %v300_v60 = vpop.permute.xlu0 %299 }
  0x9c   : > { %v304_v62 = vsel %vm303_vm6, %v300_v60, %v302_v59  ;;  %v305_v63 = vsel %vm303_vm6, %v302_v59, %v300_v60 }
  0x9d   : > { %v309_v5 = vmul.f32 %v1283_v57, %v304_v62  ;;  %v310_v6 = vmul.f32 %v1288_v58, %v305_v63 }
  0x9f   : > { %v316_v12 = vpop.permute.xlu1 %315  ;;  %v314_v13 = vpop.permute.xlu0 %313  ;;  %v1000_v14 = vpack.c.bf16 %v310_v6, %v296_v1  ;;  %v1002_v15 = vpack.c.bf16 %v309_v5, %v295_v0 }
  0xa0   : > { %v318_v16 = vsel %vm317_vm7, %v314_v13, %v316_v12  ;;  %v319_v17 = vsel %vm317_vm7, %v316_v12, %v314_v13 }
  0xa1   : > { %v323_v18 = vmul.f32 %v1303_v3, %v318_v16  ;;  %v324_v19 = vmul.f32 %v1308_v11, %v319_v17  ;;  %1001 = vmatprep.subr.bf16.mxu0 %v1000_v14 }
  0xa2   : > { %1003 = vmatpush1.bf16.msra.mxu0 %v1002_v15 }
  0xa3   : > { %v1004_v22 = vpack.c.bf16 %v1099_v21, %v324_v19  ;;  %v1007_v23 = vpack.c.bf16 %v1099_v21, %v323_v18 }
  0xa5   : > { %1006 = vmatprep.subr.msk.bf16.mxu0 %vm1316_vm10, %v1004_v22 }
  0xa6   : > { %1009 = vmatpush1.bf16.msk.msra.mxu0 %vm1316_vm10, %v1007_v23 }
  0xa9   : > { %425 = vmatmul.mubr.f32.vlgmr.msra.gmra.mrb[0].mxu0 %v327_v24 }
  0xaa   : > { %858 = vmatprep.mubr.f32.mxu0 %v1095_v2 }
 0x17c   : > { %v426_v27 = vpop.f32.mrb[0].mxu0 }
 0x17d   : > { %v433_v28 = vmul.f32 1.442695, %v426_v27  ;;  %v428_v31 = vpop.f32.mrb[1].mxu0  ;;  %vm431_vm11 = vcmp.gt.f32.partialorder %v426_v27, 0.0 }
 0x17e   : > { %v435_v32 = vmul.f32 1.442695, %v428_v31  ;;  %vm432_vm12 = vcmp.gt.f32.partialorder %v428_v31, 0.0 }
 0x17f   : > { %1073 = vpow2.f32 %v433_v28 }
 0x180   : > { %1075 = vpow2.f32 %v435_v32 }
 0x189   : > { %v1074_v33 = vpop.eup %1073 }
 0x18a   : > { %v1076_v34 = vpop.eup %1075  ;;  %v946_v35 = vadd.f32 -1.0, %v1074_v33 }
 0x18b   : > { %v947_v36 = vadd.f32 -1.0, %v1076_v34 }
 0x18c   : > { %v439_v37 = vmul.f32 1.6732632, %v946_v35 }
 0x18d   : > { %v440_v38 = vmul.f32 1.6732632, %v947_v36 }
 0x18e   : > { %v441_v41 = vsel %vm431_vm11, %v426_v27, %v439_v37 }
 0x18f   : > { %v1330_v42 = vmul.f32 1.050701, %v441_v41  ;;  %v442_v43 = vsel %vm432_vm12, %v428_v31, %v440_v38 }
 0x190   : > { %v444_v44 = vmul.f32 1.050701, %v442_v43 }
 0x191   : > { %445 = vrot.lane.b32.xlu0 %v1330_v42, %s1090_s20 }
 0x192   : > { %447 = vrot.lane.b32.xlu1 %v444_v44, %s1090_s20 }
 0x195   : > { %457 = vrot.lane.b32.xlu0 %v1330_v42, %s1089_s19 }
 0x196   : > { %459 = vrot.lane.b32.xlu1 %v444_v44, %s1089_s19 }
 0x199   : > { %469 = vrot.lane.b32.xlu0 %v1330_v42, %s1091_s21 }
 0x19a   : > { %471 = vrot.lane.b32.xlu1 %v444_v44, %s1091_s21 }
 0x19d   : > { %481 = vrot.lane.b32.xlu0 %v1330_v42, %s1092_s22 }
 0x19e   : > { %483 = vrot.lane.b32.xlu1 %v444_v44, %s1092_s22 }
 0x1a1   : > { %495 = vrot.lane.b32.xlu0 %v1330_v42, %s1093_s23 }
 0x1a2   : > { %497 = vrot.lane.b32.xlu1 %v444_v44, %s1093_s23 }
 0x1a5   : > { %507 = vrot.lane.b32.xlu0 %v1330_v42, %s1094_s24 }
 0x1a6   : > { %509 = vrot.lane.b32.xlu1 %v444_v44, %s1094_s24 }
 0x1a9   : > { %519 = vrot.lane.b32.xlu0 %v1330_v42, %s1096_s25 }
 0x1aa   : > { %521 = vrot.lane.b32.xlu1 %v444_v44, %s1096_s25 }
 0x1ad   : > { %531 = vrot.lane.b32.xlu0 %v1330_v42, %s1097_s26 }
 0x1ae   : > { %533 = vrot.lane.b32.xlu1 %v444_v44, %s1097_s26 }
 0x203   : > { %v446_v2 = vpop.permute.xlu0 %445 }
 0x204   : > { %v448_v45 = vpop.permute.xlu1 %447 }
 0x205   : > { %v449_v46 = vsel %vm218_vm1, %v446_v2, %v448_v45  ;;  %v450_v47 = vsel %vm218_vm1, %v448_v45, %v446_v2 }
 0x206   : > { %v453_v52 = vmul.f32 %v450_v47, %v1187_v8  ;;  %v454_v56 = vmul.f32 %v449_v46, %v1192_v9 }
 0x207   : > { %v458_v48 = vpop.permute.xlu0 %457 }
 0x208   : > { %v460_v49 = vpop.permute.xlu1 %459 }
 0x209   : > { %v461_v50 = vsel %vm231_vm0, %v458_v48, %v460_v49  ;;  %v462_v51 = vsel %vm231_vm0, %v460_v49, %v458_v48 }
 0x20a   : > { %v465_v55 = vmul.f32 %v1181_v7, %v462_v51  ;;  %v466_v59 = vmul.f32 %v1197_v10, %v461_v50 }
 0x20b   : > { %v470_v60 = vpop.permute.xlu0 %469 }
 0x20c   : > { %v472_v61 = vpop.permute.xlu1 %471  ;;  %v1010_v62 = vpack.c.bf16 %v466_v59, %v454_v56  ;;  %v1012_v63 = vpack.c.bf16 %v465_v55, %v453_v52 }
 0x20d   : > { %v473_v0 = vsel %vm245_vm2, %v470_v60, %v472_v61  ;;  %v474_v1 = vsel %vm245_vm2, %v472_v61, %v470_v60  ;;  %v962_v61 = vld [vmem:[%s1507_s1 + $0x8] sm:$0xff] }
 0x20e   : > { %1011 = vmatprep.subr.bf16.mxu1 %v1010_v62  ;;  %v477_v14 = vmul.f32 %v1215_v25, %v474_v1  ;;  %v478_v15 = vmul.f32 %v1221_v26, %v473_v0 }
 0x20f   : > { %v482_v5 = vpop.permute.xlu0 %481  ;;  %1013 = vmatpush1.bf16.msra.mxu1 %v1012_v63 }
 0x210   : > { %v484_v6 = vpop.permute.xlu1 %483 }
 0x211   : > { %v485_v12 = vsel %vm259_vm3, %v482_v5, %v484_v6  ;;  %v486_v13 = vsel %vm259_vm3, %v484_v6, %v482_v5 }
 0x212   : > { %v489_v16 = vmul.f32 %v1230_v29, %v486_v13  ;;  %v490_v17 = vmul.f32 %v1235_v30, %v485_v12 }
 0x213   : > { %v496_v18 = vpop.permute.xlu0 %495 }
 0x214   : > { %v498_v19 = vpop.permute.xlu1 %497  ;;  %v1014_v22 = vpack.c.bf16 %v490_v17, %v478_v15  ;;  %v1016_v23 = vpack.c.bf16 %v489_v16, %v477_v14 }
 0x215   : > { %v499_v24 = vsel %vm275_vm4, %v496_v18, %v498_v19  ;;  %v500_v27 = vsel %vm275_vm4, %v498_v19, %v496_v18 }
 0x216   : > { %v503_v28 = vmul.f32 %v1249_v39, %v499_v24  ;;  %v504_v31 = vmul.f32 %v1254_v40, %v500_v27  ;;  %1015 = vmatprep.subr.bf16.mxu1 %v1014_v22 }
 0x217   : > { %v508_v32 = vpop.permute.xlu0 %507  ;;  %1017 = vmatpush1.bf16.msra.mxu1 %v1016_v23 }
 0x218   : > { %v510_v33 = vpop.permute.xlu1 %509  ;;  %v1018_v34 = vpack.c.bf16 %v504_v31, %v444_v44  ;;  %v1020_v35 = vpack.c.bf16 %v503_v28, %v1330_v42 }
 0x219   : > { %v511_v36 = vsel %vm289_vm5, %v508_v32, %v510_v33  ;;  %v512_v37 = vsel %vm289_vm5, %v510_v33, %v508_v32 }
 0x21a   : > { %1019 = vmatprep.subr.bf16.mxu1 %v1018_v34  ;;  %v515_v44 = vmul.f32 %v1268_v53, %v511_v36  ;;  %v516_v42 = vmul.f32 %v1274_v54, %v512_v37 }
 0x21b   : > { %v520_v38 = vpop.permute.xlu0 %519  ;;  %1021 = vmatpush1.bf16.msra.mxu1 %v1020_v35 }
 0x21c   : > { %v522_v41 = vpop.permute.xlu1 %521 }
 0x21d   : > { %v523_v43 = vsel %vm303_vm6, %v520_v38, %v522_v41  ;;  %v524_v2 = vsel %vm303_vm6, %v522_v41, %v520_v38 }
 0x21e   : > { %v527_v45 = vmul.f32 %v1283_v57, %v523_v43  ;;  %v528_v46 = vmul.f32 %v1288_v58, %v524_v2 }
 0x21f   : > { %v532_v47 = vpop.permute.xlu0 %531 }
 0x220   : > { %v534_v48 = vpop.permute.xlu1 %533  ;;  %v1022_v49 = vpack.c.bf16 %v528_v46, %v516_v42  ;;  %v1024_v50 = vpack.c.bf16 %v527_v45, %v515_v44 }
 0x221   : > { %v535_v51 = vsel %vm317_vm7, %v532_v47, %v534_v48  ;;  %v536_v52 = vsel %vm317_vm7, %v534_v48, %v532_v47 }
 0x222   : > { %v539_v55 = vmul.f32 %v1303_v3, %v535_v51  ;;  %v540_v56 = vmul.f32 %v1308_v11, %v536_v52  ;;  %1023 = vmatprep.subr.bf16.mxu1 %v1022_v49 }
 0x223   : > { %1025 = vmatpush1.bf16.msra.mxu1 %v1024_v50 }
 0x224   : > { %v1026_v59 = vpack.c.bf16 %v1099_v21, %v540_v56  ;;  %v1029_v60 = vpack.c.bf16 %v1099_v21, %v539_v55 }
 0x226   : > { %1028 = vmatprep.subr.msk.bf16.mxu1 %vm1316_vm10, %v1026_v59 }
 0x227   : > { %1031 = vmatpush1.bf16.msk.msra.mxu1 %vm1316_vm10, %v1029_v60 }
 0x22a   : > { %642 = vmatmul.mubr.f32.vlgmr.msra.gmra.mrb[0].mxu1 %v962_v61 }
 0x2fd   : > { %v643_v62 = vpop.f32.mrb[0].mxu1 }
 0x2fe   : > { %v650_v63 = vmul.f32 1.442695, %v643_v62  ;;  %v645_v0 = vpop.f32.mrb[1].mxu1  ;;  %vm648_vm13 = vcmp.gt.f32.partialorder %v643_v62, 0.0 }
 0x2ff   : > { %v652_v1 = vmul.f32 1.442695, %v645_v0  ;;  %vm649_vm14 = vcmp.gt.f32.partialorder %v645_v0, 0.0 }
 0x300   : > { %1077 = vpow2.f32 %v650_v63 }
 0x301   : > { %1079 = vpow2.f32 %v652_v1 }
 0x30a   : > { %v1078_v5 = vpop.eup %1077 }
 0x30b   : > { %v1080_v6 = vpop.eup %1079  ;;  %v963_v12 = vadd.f32 -1.0, %v1078_v5 }
 0x30c   : > { %v964_v13 = vadd.f32 -1.0, %v1080_v6 }
 0x30d   : > { %v656_v14 = vmul.f32 1.6732632, %v963_v12 }
 0x30e   : > { %v657_v15 = vmul.f32 1.6732632, %v964_v13 }
 0x30f   : > { %v658_v16 = vsel %vm648_vm13, %v643_v62, %v656_v14 }
 0x310   : > { %v1414_v17 = vmul.f32 1.050701, %v658_v16  ;;  %v659_v18 = vsel %vm649_vm14, %v645_v0, %v657_v15 }
 0x311   : > { %v661_v19 = vmul.f32 1.050701, %v659_v18 }
 0x312   : > { %662 = vrot.lane.b32.xlu0 %v1414_v17, %s1090_s20 }
 0x313   : > { %664 = vrot.lane.b32.xlu1 %v661_v19, %s1090_s20 }
 0x316   : > { %674 = vrot.lane.b32.xlu0 %v1414_v17, %s1089_s19 }
 0x317   : > { %676 = vrot.lane.b32.xlu1 %v661_v19, %s1089_s19 }
 0x31a   : > { %686 = vrot.lane.b32.xlu0 %v1414_v17, %s1091_s21 }
 0x31b   : > { %688 = vrot.lane.b32.xlu1 %v661_v19, %s1091_s21 }
 0x31e   : > { %698 = vrot.lane.b32.xlu0 %v1414_v17, %s1092_s22 }
 0x31f   : > { %700 = vrot.lane.b32.xlu1 %v661_v19, %s1092_s22 }
 0x322   : > { %712 = vrot.lane.b32.xlu0 %v1414_v17, %s1093_s23 }
 0x323   : > { %714 = vrot.lane.b32.xlu1 %v661_v19, %s1093_s23  ;;  %s172_s23 = scalar_lea.vmem %s1509_s3, %s929_s15 }
 0x326   : > { %724 = vrot.lane.b32.xlu0 %v1414_v17, %s1094_s24 }
 0x327   : > { %726 = vrot.lane.b32.xlu1 %v661_v19, %s1094_s24 }
 0x32a   : > { %736 = vrot.lane.b32.xlu0 %v1414_v17, %s1096_s25 }
 0x32b   : > { %738 = vrot.lane.b32.xlu1 %v661_v19, %s1096_s25 }
 0x32e   : > { %748 = vrot.lane.b32.xlu0 %v1414_v17, %s1097_s26 }
 0x32f   : > { %750 = vrot.lane.b32.xlu1 %v661_v19, %s1097_s26 }
 0x384   : > { %v663_v22 = vpop.permute.xlu0 %662 }
 0x385   : > { %v665_v23 = vpop.permute.xlu1 %664 }
 0x386   : > { %v666_v24 = vsel %vm218_vm1, %v663_v22, %v665_v23  ;;  %v667_v27 = vsel %vm218_vm1, %v665_v23, %v663_v22 }
 0x387   : > { %v670_v34 = vmul.f32 %v667_v27, %v1187_v8  ;;  %v671_v35 = vmul.f32 %v666_v24, %v1192_v9 }
 0x388   : > { %v675_v28 = vpop.permute.xlu0 %674 }
 0x389   : > { %v677_v31 = vpop.permute.xlu1 %676 }
 0x38a   : > { %v678_v32 = vsel %vm231_vm0, %v675_v28, %v677_v31  ;;  %v679_v33 = vsel %vm231_vm0, %v677_v31, %v675_v28 }
 0x38b   : > { %v682_v36 = vmul.f32 %v1181_v7, %v679_v33  ;;  %v683_v37 = vmul.f32 %v1197_v10, %v678_v32 }
 0x38c   : > { %v687_v38 = vpop.permute.xlu0 %686 }
 0x38d   : > { %v1034_v41 = vpack.c.bf16 %v682_v36, %v670_v34  ;;  %v689_v43 = vpop.permute.xlu1 %688  ;;  %v1032_v2 = vpack.c.bf16 %v683_v37, %v671_v35 }
 0x38e   : > { %v690_v44 = vsel %vm245_vm2, %v687_v38, %v689_v43  ;;  %v691_v42 = vsel %vm245_vm2, %v689_v43, %v687_v38 }
 0x38f   : > { %1033 = vmatprep.subr.bf16.mxu0 %v1032_v2  ;;  %v694_v10 = vmul.f32 %v1215_v25, %v691_v42  ;;  %v695_v46 = vmul.f32 %v1221_v26, %v690_v44 }
 0x390   : > { %v699_v45 = vpop.permute.xlu0 %698  ;;  %1035 = vmatpush1.bf16.msra.mxu0 %v1034_v41 }
 0x391   : > { %v701_v8 = vpop.permute.xlu1 %700 }
 0x392   : > { %v702_v9 = vsel %vm259_vm3, %v699_v45, %v701_v8  ;;  %v703_v7 = vsel %vm259_vm3, %v701_v8, %v699_v45 }
 0x393   : > { %v706_v47 = vmul.f32 %v1230_v29, %v703_v7  ;;  %v707_v48 = vmul.f32 %v1235_v30, %v702_v9 }
 0x394   : > { %v713_v49 = vpop.permute.xlu0 %712 }
 0x395   : > { %v1038_v50 = vpack.c.bf16 %v706_v47, %v694_v10  ;;  %v715_v51 = vpop.permute.xlu1 %714  ;;  %v1036_v52 = vpack.c.bf16 %v707_v48, %v695_v46 }
 0x396   : > { %v716_v55 = vsel %vm275_vm4, %v713_v49, %v715_v51  ;;  %v717_v56 = vsel %vm275_vm4, %v715_v51, %v713_v49 }
 0x397   : > { %v720_v59 = vmul.f32 %v1249_v39, %v716_v55  ;;  %v721_v25 = vmul.f32 %v1254_v40, %v717_v56  ;;  %1037 = vmatprep.subr.bf16.mxu0 %v1036_v52 }
 0x398   : > { %v725_v26 = vpop.permute.xlu0 %724  ;;  %1039 = vmatpush1.bf16.msra.mxu0 %v1038_v50 }
 0x399   : > { %v1042_v29 = vpack.c.bf16 %v720_v59, %v1414_v17  ;;  %v727_v30 = vpop.permute.xlu1 %726  ;;  %v1040_v60 = vpack.c.bf16 %v721_v25, %v661_v19 }
 0x39a   : > { %v728_v61 = vsel %vm289_vm5, %v725_v26, %v727_v30  ;;  %v729_v62 = vsel %vm289_vm5, %v727_v30, %v725_v26 }
 0x39b   : > { %1041 = vmatprep.subr.bf16.mxu0 %v1040_v60  ;;  %v732_v1 = vmul.f32 %v1268_v53, %v728_v61  ;;  %v733_v5 = vmul.f32 %v1274_v54, %v729_v62 }
 0x39c   : > { %v737_v63 = vpop.permute.xlu0 %736  ;;  %1043 = vmatpush1.bf16.msra.mxu0 %v1042_v29 }
 0x39d   : > { %v739_v0 = vpop.permute.xlu1 %738 }
 0x39e   : > { %v740_v39 = vsel %vm303_vm6, %v737_v63, %v739_v0  ;;  %v741_v40 = vsel %vm303_vm6, %v739_v0, %v737_v63 }
 0x39f   : > { %v744_v6 = vmul.f32 %v1283_v57, %v740_v39  ;;  %v745_v12 = vmul.f32 %v1288_v58, %v741_v40 }
 0x3a0   : > { %v749_v13 = vpop.permute.xlu0 %748 }
 0x3a1   : > { %v1046_v14 = vpack.c.bf16 %v744_v6, %v732_v1  ;;  %v751_v15 = vpop.permute.xlu1 %750  ;;  %v1044_v16 = vpack.c.bf16 %v745_v12, %v733_v5 }
 0x3a2   : > { %v752_v17 = vsel %vm317_vm7, %v749_v13, %v751_v15  ;;  %v753_v18 = vsel %vm317_vm7, %v751_v15, %v749_v13 }
 0x3a3   : > { %v756_v19 = vmul.f32 %v1303_v3, %v752_v17  ;;  %v757_v53 = vmul.f32 %v1308_v11, %v753_v18  ;;  %1045 = vmatprep.subr.bf16.mxu0 %v1044_v16 }
 0x3a4   : > { %1047 = vmatpush1.bf16.msra.mxu0 %v1046_v14 }
 0x3a5   : > { %v1048_v54 = vpack.c.bf16 %v1099_v21, %v757_v53  ;;  %v1051_v57 = vpack.c.bf16 %v1099_v21, %v756_v19 }
 0x3a7   : > { %1050 = vmatprep.subr.msk.bf16.mxu0 %vm1316_vm10, %v1048_v54 }
 0x3a8   : > { %1053 = vmatpush1.bf16.msk.msra.mxu0 %vm1316_vm10, %v1051_v57 }
 0x3ab   : > { %859 = vmatmul.mubr.f32.vlgmr.msra.gmra.mrb[2].mxu0 %v979_v4 }
 0x47e   : > { %v860_v58 = vpop.f32.mrb[2].mxu0 }
 0x47f   : > { %865 = vst [vmem:[%s172_s23] sm:$0xff] %v860_v58  ;;  %v862_v3 = vpop.f32.mrb[3].mxu0 }
 0x480   : > { %866 = vst [vmem:[%s172_s23 + $0x8] sm:$0xff] %v862_v3 }
 0x481 PF: > { %s13_s12 = sadd.s32 1, %s1087_s12  }
 0x482   : > { %p10_p4 = scmp.ge.s32.totalorder %s13_s12, 4  }
 0x484   :  { %12 = sbr.rel (!%p10_p4) target bundleno = 1 (0x1), region = 71 }

</bundles_post_ra>
